<compile_context>
chip_gen: v6e
topology: v6e:2x2x1
jax: 0.10.0
libtpu: 0.0.40
codegen_flags: <defaults>
</compile_context>

<pallas_src>
import functools

import jax
import jax.numpy as jnp
from jax import lax
from jax.experimental import pallas as pl
from jax.experimental.pallas import tpu as pltpu

_EPS = 1e-12  # torch.nn.functional.normalize default eps


def _round_up(x, m):
    return ((x + m - 1) // m) * m


def _vmem_budget_bytes():
    """~75% of per-core VMEM capacity; conservative 64 MiB fallback (v7x)."""
    try:
        cap = int(pltpu.get_tpu_info().vmem_capacity_bytes)
    except Exception:
        cap = 64 * 1024 * 1024
    return (3 * cap) // 4


def _l2normalize_f32(x):
    # x * rsqrt(max(sum(x^2), eps^2))  ==  x / max(||x||, eps)   (EUP rsqrt)
    sumsq = jnp.sum(x * x, axis=-1, keepdims=True)
    return x * lax.rsqrt(jnp.maximum(sumsq, jnp.float32(_EPS * _EPS)))


def _normalize_keys_kernel(x_ref, o_ref):
    x = x_ref[...].astype(jnp.float32)
    o_ref[...] = _l2normalize_f32(x).astype(o_ref.dtype)


def _query_pos_kernel(q_ref, p_ref, qn_ref, pos_ref, *, inv_t):
    q = q_ref[...].astype(jnp.float32)
    p = p_ref[...].astype(jnp.float32)
    qn = _l2normalize_f32(q) * jnp.float32(inv_t)   # fold 1/temperature into q once
    pn = _l2normalize_f32(p)
    pos_ref[...] = jnp.sum(qn * pn, axis=-1, keepdims=True)   # scaled positive logit
    qn_ref[...] = qn.astype(qn_ref.dtype)


def _info_nce_kernel(qn_ref, pos_ref, nk_ref, out_ref, sacc_scr, *, inv_t, pad_count):
    mi = pl.program_id(1)
    inv_t_f = jnp.float32(inv_t)

    # First negatives step for this query tile: seed the online sum-exp with the
    # (pre-computed, already scaled) positive term.  Constant row max = 1/t.
    @pl.when(mi == 0)
    def _():
        sacc_scr[...] = jnp.exp(pos_ref[...] - inv_t_f)

    # Negative logits: MXU, contracting dim 1 of both operands (no transpose).
    # qn already carries the 1/temperature scale, so the hot loop is exp(x - c).
    neg = lax.dot_general(qn_ref[...], nk_ref[...], (((1,), (1,)), ((), ())),
                          preferred_element_type=jnp.float32)      # (tn, tm)
    sacc_scr[...] += jnp.sum(jnp.exp(neg - inv_t_f), axis=-1, keepdims=True)

    # Last negatives step: remove the exact contribution of zero-padded negative
    # rows (each is exp(-1/t)), guard underflow, finalize per-sample loss.
    @pl.when(mi == pl.num_programs(1) - 1)
    def _():
        s = sacc_scr[...]
        if pad_count:  # static
            s = s - jnp.float32(pad_count) * jnp.exp(-inv_t_f)
        s = jnp.maximum(s, jnp.float32(jnp.finfo(jnp.float32).tiny))
        out_ref[...] = inv_t_f + jnp.log(s) - pos_ref[...]


def info_nce_pallas(query, positive_key, negative_keys,
                    temperature=0.1, reduction="mean",
                    block_n=None, block_m=None, mxu_dtype=None):
    """InfoNCE loss (negative_mode='unpaired') via fused Pallas TPU kernels.

    mxu_dtype: dtype of the normalized operands fed to the MXU.  Defaults to
    bfloat16 when the inputs are bfloat16, float32 otherwise.  Passing
    jnp.bfloat16 for float32 inputs roughly halves HBM traffic of the
    re-streamed keys and doubles MXU rate at a small precision cost.
    """
    n, d = query.shape
    m, d2 = negative_keys.shape
    assert positive_key.shape == (n, d) and d2 == d

    if mxu_dtype is None:
        mxu_dtype = jnp.bfloat16 if query.dtype == jnp.bfloat16 else jnp.float32
    op_size = jnp.dtype(mxu_dtype).itemsize

    d_pad = _round_up(d, 128)
    sub = 16 if op_size == 2 else 8        # packed-bf16 sublane alignment

    # Query-row tile: keep >= 2 "parallel" tiles when n allows (v7x has 2 TCs).
    if block_n is not None:
        tn = block_n
    elif n >= 512:
        tn = 256
    elif n >= 256:
        tn = 128
    else:
        tn = _round_up(n, sub)
    n_pad = _round_up(n, tn)

    budget = _vmem_budget_bytes()

    # Negatives tile: largest tm (<= 2048) whose double-buffered tiles fit the
    # VMEM budget next to the resident query tile and the small (tn,1) buffers.
    if block_m is not None:
        tm = block_m
    else:
        fixed = 2 * tn * d_pad * op_size + 8 * tn * 128 * 4 + (2 << 20)
        per_row = 2 * d_pad * op_size
        tm = max(128, (budget - fixed) // per_row)
        tm = min(tm, 2048, _round_up(m, 128))
        tm = (tm // 256) * 256 if tm >= 512 else (tm // 128) * 128
        tm = max(tm, 128)
    m_pad = _round_up(m, tm)

    inv_t = 1.0 / float(temperature)

    qp = jnp.pad(query, ((0, n_pad - n), (0, d_pad - d)))
    pp = jnp.pad(positive_key, ((0, n_pad - n), (0, d_pad - d)))
    nkp = jnp.pad(negative_keys, ((0, m_pad - m), (0, d_pad - d)))

    # ---- Prologue A: normalize negatives once (small, memory-bound row tile).
    if m_pad >= 256 and m_pad % 256 == 0:
        nk_tile = 256
    elif m_pad % 128 == 0:
        nk_tile = 128
    else:
        nk_tile = tm
    nk_norm = pl.pallas_call(
        _normalize_keys_kernel,
        out_shape=jax.ShapeDtypeStruct((m_pad, d_pad), mxu_dtype),
        grid=(m_pad // nk_tile,),
        in_specs=[pl.BlockSpec((nk_tile, d_pad), lambda i: (i, 0))],
        out_specs=pl.BlockSpec((nk_tile, d_pad), lambda i: (i, 0)),
        compiler_params=pltpu.CompilerParams(
            dimension_semantics=("parallel",), vmem_limit_bytes=budget),
    )(nkp)

    # ---- Prologue B: normalize queries/positives once, fold 1/t, positive logit.
    qn_scaled, pos = pl.pallas_call(
        functools.partial(_query_pos_kernel, inv_t=inv_t),
        out_shape=(jax.ShapeDtypeStruct((n_pad, d_pad), mxu_dtype),
                   jax.ShapeDtypeStruct((n_pad, 1), jnp.float32)),
        grid=(n_pad // tn,),
        in_specs=[pl.BlockSpec((tn, d_pad), lambda i: (i, 0)),
                  pl.BlockSpec((tn, d_pad), lambda i: (i, 0))],
        out_specs=(pl.BlockSpec((tn, d_pad), lambda i: (i, 0)),
                   pl.BlockSpec((tn, 1), lambda i: (i, 0))),
        compiler_params=pltpu.CompilerParams(
            dimension_semantics=("parallel",), vmem_limit_bytes=budget),
    )(qp, pp)

    # ---- Main kernel: online logsumexp over negative tiles.
    kernel = functools.partial(_info_nce_kernel, inv_t=inv_t, pad_count=m_pad - m)
    per_sample = pl.pallas_call(
        kernel,
        out_shape=jax.ShapeDtypeStruct((n_pad, 1), jnp.float32),
        grid_spec=pltpu.PrefetchScalarGridSpec(
            num_scalar_prefetch=0,
            grid=(n_pad // tn, m_pad // tm),
            in_specs=[
                pl.BlockSpec((tn, d_pad), lambda i, j: (i, 0)),   # scaled, normalized q
                pl.BlockSpec((tn, 1), lambda i, j: (i, 0)),       # scaled positive logit
                pl.BlockSpec((tm, d_pad), lambda i, j: (j, 0)),   # normalized negatives
            ],
            out_specs=pl.BlockSpec((tn, 1), lambda i, j: (i, 0)),
            scratch_shapes=[pltpu.VMEM((tn, 1), jnp.float32)],    # running sum-exp
        ),
        compiler_params=pltpu.CompilerParams(
            dimension_semantics=("parallel", "arbitrary"),
            vmem_limit_bytes=budget),
    )(qn_scaled, pos, nk_norm)

    losses = per_sample[:n, 0]
    if reduction == "mean":
        return jnp.mean(losses)
    if reduction == "sum":
        return jnp.sum(losses)
    if reduction == "none":
        return losses
    raise ValueError(f"unsupported reduction: {reduction}")


class InfoNCE:
    """JAX/Pallas port of the PyTorch InfoNCE module (unpaired negatives)."""

    def __init__(self, temperature=0.1, reduction="mean", negative_mode="unpaired"):
        self.temperature = temperature
        self.reduction = reduction
        self.negative_mode = negative_mode

    def __call__(self, query, positive_key, negative_keys=None):
        if self.negative_mode != "unpaired" or negative_keys is None:
            # TODO(synk): 'paired' mode and negative_keys=None (in-batch negatives) not ported.
            raise NotImplementedError("only 'unpaired' with explicit negatives")
        return info_nce_pallas(query, positive_key, negative_keys,
                               temperature=self.temperature,
                               reduction=self.reduction)


def _info_nce_ref(q, p, nk, temperature=0.1, reduction="mean"):
    """Pure-JAX reference mirroring the PyTorch info_nce (unpaired)."""
    def l2norm(x):
        nrm = jnp.sqrt(jnp.sum(x * x, axis=-1, keepdims=True))
        return x / jnp.maximum(nrm, _EPS)
    q, p, nk = l2norm(q), l2norm(p), l2norm(nk)
    pos = jnp.sum(q * p, axis=1, keepdims=True)
    neg = q @ nk.T
    logits = jnp.concatenate([pos, neg], axis=1) / temperature
    lse = jax.scipy.special.logsumexp(logits, axis=-1)
    losses = lse - logits[:, 0]
    if reduction == "mean":
        return jnp.mean(losses)
    if reduction == "sum":
        return jnp.sum(losses)
    return losses


if __name__ == "__main__":
    key = jax.random.PRNGKey(0)

    # Test 1: toy shapes consistent with the module (batch=8, negatives=16, dim=32).
    N, M, D = 8, 16, 32
    kq, kp, kn, key = jax.random.split(key, 4)
    query = jax.random.normal(kq, (N, D), dtype=jnp.float32)
    positive_key = jax.random.normal(kp, (N, D), dtype=jnp.float32)
    negative_keys = jax.random.normal(kn, (M, D), dtype=jnp.float32)

    loss_fn = InfoNCE(temperature=0.1, reduction="mean", negative_mode="unpaired")
    loss = jax.block_until_ready(loss_fn(query, positive_key, negative_keys))
    ref = _info_nce_ref(query, positive_key, negative_keys, temperature=0.1)
    assert jnp.allclose(loss, ref, rtol=1e-5, atol=1e-5), (loss, ref)

    # Test 2: multi-tile case exercising N-tile parallelism, the online accumulator
    # across M tiles, and the scalar padded-column correction.
    N2, M2, D2 = 24, 300, 72
    kq2, kp2, kn2, key = jax.random.split(key, 4)
    q2 = jax.random.normal(kq2, (N2, D2), dtype=jnp.float32)
    p2 = jax.random.normal(kp2, (N2, D2), dtype=jnp.float32)
    nk2 = jax.random.normal(kn2, (M2, D2), dtype=jnp.float32)
    loss2 = jax.block_until_ready(
        info_nce_pallas(q2, p2, nk2, temperature=0.1, reduction="mean",
                        block_n=8, block_m=128))
    ref2 = _info_nce_ref(q2, p2, nk2, temperature=0.1)
    assert jnp.allclose(loss2, ref2, rtol=1e-5, atol=1e-5), (loss2, ref2)

    # Test 3: bfloat16 MXU-operand path (the HBM/MXU throughput lever) at the
    # correspondingly looser tolerance.
    loss3 = jax.block_until_ready(
        info_nce_pallas(query, positive_key, negative_keys, temperature=0.1,
                        reduction="mean", mxu_dtype=jnp.bfloat16))
    assert jnp.allclose(loss3, ref, rtol=2e-2, atol=2e-2), (loss3, ref)

    print("KERNEL_OK")
</pallas_src>

<mosaic_0001>
module attributes {stable_mosaic.version = 11 : i64} {
  func.func @_normalize_keys_kernel(%arg0: i32, %arg1: memref<128x128xf32, #tpu.memory_space<vmem>>, %arg2: memref<128x128xf32, #tpu.memory_space<vmem>>) attributes {dimension_semantics = [#tpu.dimension_semantics<parallel>], iteration_bounds = array<i64: 1>, scalar_prefetch = 0 : i64, scratch_operands = 0 : i64, tpu.core_type = #tpu.core_type<tc>, window_params = [{transform_indices = @transform_0, window_bounds = array<i64: 128, 128>}, {transform_indices = @transform_1, window_bounds = array<i64: 128, 128>}]} {
    %c0 = arith.constant 0 : index
    %c0_0 = arith.constant 0 : index
    %0 = vector.load %arg1[%c0, %c0_0] : memref<128x128xf32, #tpu.memory_space<vmem>>, vector<128x128xf32>
    %1 = arith.mulf %0, %0 : vector<128x128xf32>
    %cst = arith.constant dense<0.000000e+00> : vector<128xf32>
    %2 = vector.multi_reduction <add>, %1, %cst [1] : vector<128x128xf32> to vector<128xf32>
    %3 = vector.shape_cast %2 : vector<128xf32> to vector<128x1xf32>
    %cst_1 = arith.constant 1.000000e-24 : f32
    %4 = vector.broadcast %cst_1 : f32 to vector<128x1xf32>
    %5 = arith.maximumf %3, %4 : vector<128x1xf32>
    %6 = math.rsqrt %5 : vector<128x1xf32>
    %7 = vector.broadcast %6 : vector<128x1xf32> to vector<128x128xf32>
    %8 = arith.mulf %0, %7 : vector<128x128xf32>
    %c0_2 = arith.constant 0 : index
    %c0_3 = arith.constant 0 : index
    %9 = vector.load %arg2[%c0_2, %c0_3] : memref<128x128xf32, #tpu.memory_space<vmem>>, vector<128x128xf32>
    tpu.vector_store %arg2[%c0_2, %c0_3], %8 {strides = array<i32>} : memref<128x128xf32, #tpu.memory_space<vmem>>, vector<128x128xf32>,
    return
  }
  func.func @transform_0(%arg0: i32) -> (i32, i32) {
    %c0_i32 = arith.constant 0 : i32
    %c0_i32_0 = arith.constant 0 : i32
    return %arg0, %c0_i32 : i32, i32
  }
  func.func @transform_1(%arg0: i32) -> (i32, i32) {
    %c0_i32 = arith.constant 0 : i32
    %c0_i32_0 = arith.constant 0 : i32
    return %arg0, %c0_i32 : i32, i32
  }
}

</mosaic_0001>

<bundles_post_ra>
// kernel: tpu_custom_call.1
= control target key start
LH: loop header
LB: loop body
LE: loop exit
PB: predicated region body
PF: predicated region fallthrough
CT: control target
= control target key end

     0   :  { %6 = vsyncpa [#allocation3], 0  ;;  %s354_s0 = inlined_call_operand.hbm [shape: f32[128,128], index: 0, kind: input, shape index: {}]   ;;  %s355_s1 = inlined_call_operand.hbm [shape: f32[128,128], index: 1, kind: output, shape index: {}]  }
   0x1   :  { %7 = vsyncpa [#allocation4], 0  ;;  %s248_s6 = smov [#allocation2]  }
   0x2   :  { %s13_s7 = sshll.u32 %s248_s6, 4  ;;  %s14_s7 = int_to_ptr.vmem [resolvable:$true] %s13_s7 }
   0x3   :  { %s212_s8 = scalar_lea.vmem %s14_s7, 2048  ;;  %p217_p1 = scmp.lt.s32.totalorder %s14_s7, %s14_s7 }
   0x4   :  { %p213_p0 = scmp.ne.s32.totalorder %s14_s7, %s212_s8  ;;  %p218_p2 = scmp.lt.s32.totalorder %s212_s8, %s212_s8 }
   0x6   :  { %p219_p3 = por %p218_p2, %p217_p1 }
   0x8   :  { %p220_p4 = pnand %p219_p3, %p213_p0 }
   0xa   :  { %223 = shalt.err (!%p220_p4)
}
   0xb   :  { %s249_s9 = smov 128   ;;  %s250_s10 = smov 8  }
   0xc   :  { %19 = dma.hbm_to_vmem [thread:$0]  %s354_s0, 2048, %s14_s7, [#allocation3], %s249_s9, %s249_s9, %s250_s10  }
   0xd   :  { %244 = dma.done.wait [#allocation3], 2048  }
   0xe   :  { %245 = vsyncadd [#allocation3], 4294965248  ;;  %v268_v0 = vld [vmem:[#allocation2 + $0x10] sm:$0xff]  ;;  %v270_v1 = vld [vmem:[#allocation2] sm:$0xff]  ;;  %s251_s0 = smov [#allocation5]  }
   0xf   :  { %v272_v2 = vld [vmem:[#allocation2 + $0x18] sm:$0xff]  ;;  %v41_v3 = vmul.f32 %v268_v0, %v268_v0  ;;  %v39_v4 = vmul.f32 %v270_v1, %v270_v1  ;;  %v278_v5 = vld [vmem:[#allocation2 + $0x8] sm:$0xff]  ;;  %v286_v9 = vld [vmem:[#allocation2 + $0x20] sm:$0xff]  ;;  %s156_s13 = sshll.u32 %s251_s0, 4  ;;  %s157_s13 = int_to_ptr.vmem [resolvable:$true] %s156_s13 }
  0x10   :  { %v42_v6 = vmul.f32 %v272_v2, %v272_v2  ;;  %v40_v7 = vmul.f32 %v278_v5, %v278_v5  ;;  %v284_v8 = vld [vmem:[#allocation2 + $0x28] sm:$0xff]  ;;  %v43_v11 = vmul.f32 %v286_v9, %v286_v9  ;;  %v292_v12 = vld [vmem:[#allocation2 + $0x38] sm:$0xff]  ;;  %v294_v13 = vld [vmem:[#allocation2 + $0x30] sm:$0xff]  ;;  %s224_s14 = scalar_lea.vmem %s157_s13, 2048  ;;  %p229_p6 = scmp.lt.s32.totalorder %s157_s13, %s157_s13 }
  0x11   :  { %59 = vadd.xlane.f32.xlu1 %v41_v3  ;;  %55 = vadd.xlane.f32.xlu0 %v39_v4  ;;  %v44_v10 = vmul.f32 %v284_v8, %v284_v8  ;;  %v46_v14 = vmul.f32 %v292_v12, %v292_v12  ;;  %v45_v15 = vmul.f32 %v294_v13, %v294_v13  ;;  %v300_v16 = vld [vmem:[#allocation2 + $0x48] sm:$0xff]  ;;  %v302_v17 = vld [vmem:[#allocation2 + $0x40] sm:$0xff]  ;;  %v308_v20 = vld [vmem:[#allocation2 + $0x58] sm:$0xff]  ;;  %p225_p5 = scmp.ne.s32.totalorder %s157_s13, %s224_s14  ;;  %p230_p7 = scmp.lt.s32.totalorder %s224_s14, %s224_s14 }
  0x12   :  { %v48_v18 = vmul.f32 %v300_v16, %v300_v16  ;;  %v47_v19 = vmul.f32 %v302_v17, %v302_v17  ;;  %v310_v21 = vld [vmem:[#allocation2 + $0x50] sm:$0xff]  ;;  %v50_v22 = vmul.f32 %v308_v20, %v308_v20  ;;  %v316_v24 = vld [vmem:[#allocation2 + $0x68] sm:$0xff]  ;;  %v318_v25 = vld [vmem:[#allocation2 + $0x60] sm:$0xff] }
  0x13   :  { %v49_v23 = vmul.f32 %v310_v21, %v310_v21  ;;  %v52_v26 = vmul.f32 %v316_v24, %v316_v24  ;;  %v51_v27 = vmul.f32 %v318_v25, %v318_v25  ;;  %v324_v28 = vld [vmem:[#allocation2 + $0x78] sm:$0xff]  ;;  %v326_v29 = vld [vmem:[#allocation2 + $0x70] sm:$0xff]  ;;  %p231_p8 = por %p230_p7, %p229_p6 }
  0x14   :  { %v54_v30 = vmul.f32 %v324_v28, %v324_v28  ;;  %v53_v31 = vmul.f32 %v326_v29, %v326_v29 }
  0x15   :  { %61 = vadd.xlane.f32.xlu1 %v42_v6  ;;  %57 = vadd.xlane.f32.xlu0 %v40_v7  ;;  %p232_p9 = pnand %p231_p8, %p225_p5 }
  0x19   :  { %65 = vadd.xlane.f32.xlu1 %v44_v10  ;;  %63 = vadd.xlane.f32.xlu0 %v43_v11 }
  0x1d   :  { %69 = vadd.xlane.f32.xlu1 %v46_v14  ;;  %67 = vadd.xlane.f32.xlu0 %v45_v15 }
  0x21   :  { %73 = vadd.xlane.f32.xlu1 %v48_v18  ;;  %71 = vadd.xlane.f32.xlu0 %v47_v19 }
  0x25   :  { %77 = vadd.xlane.f32.xlu1 %v50_v22  ;;  %75 = vadd.xlane.f32.xlu0 %v49_v23 }
  0x29   :  { %81 = vadd.xlane.f32.xlu1 %v52_v26  ;;  %79 = vadd.xlane.f32.xlu0 %v51_v27 }
  0x2d   :  { %85 = vadd.xlane.f32.xlu1 %v54_v30  ;;  %83 = vadd.xlane.f32.xlu0 %v53_v31 }
  0x9a   :  { %v60_v32 = vpop.xlane.xlu1 %59  ;;  %v56_v33 = vpop.xlane.xlu0 %55 }
  0x9b   :  { %v89_v34 = vmax.f32 %v60_v32, 1e-24  ;;  %v87_v35 = vmax.f32 %v56_v33, 1e-24 }
  0x9d   :  { %172 = vrsqrt.f32 %v89_v34 }
  0x9e   :  { %174 = vrsqrt.f32 %v87_v35  ;;  %v62_v36 = vpop.xlane.xlu1 %61  ;;  %v58_v37 = vpop.xlane.xlu0 %57 }
  0x9f   :  { %v90_v38 = vmax.f32 %v62_v36, 1e-24  ;;  %v88_v39 = vmax.f32 %v58_v37, 1e-24 }
  0xa1   :  { %176 = vrsqrt.f32 %v90_v38 }
  0xa2   :  { %178 = vrsqrt.f32 %v88_v39  ;;  %v66_v40 = vpop.xlane.xlu1 %65  ;;  %v64_v41 = vpop.xlane.xlu0 %63 }
  0xa3   :  { %v92_v42 = vmax.f32 %v66_v40, 1e-24  ;;  %v91_v43 = vmax.f32 %v64_v41, 1e-24 }
  0xa5   :  { %180 = vrsqrt.f32 %v92_v42 }
  0xa6   :  { %182 = vrsqrt.f32 %v91_v43  ;;  %v70_v44 = vpop.xlane.xlu1 %69  ;;  %v68_v45 = vpop.xlane.xlu0 %67 }
  0xa7   :  { %v94_v46 = vmax.f32 %v70_v44, 1e-24  ;;  %v93_v47 = vmax.f32 %v68_v45, 1e-24 }
  0xa9   :  { %184 = vrsqrt.f32 %v94_v46 }
  0xaa   :  { %v173_v48 = vpop.eup %172  ;;  %186 = vrsqrt.f32 %v93_v47  ;;  %v74_v49 = vpop.xlane.xlu1 %73 }
  0xab   :  { %v72_v50 = vpop.xlane.xlu0 %71  ;;  %v175_v51 = vpop.eup %174  ;;  %v121_v52 = vmul.f32 %v173_v48, %v268_v0  ;;  %v96_v53 = vmax.f32 %v74_v49, 1e-24 }
  0xac   :  { %v95_v54 = vmax.f32 %v72_v50, 1e-24  ;;  %v119_v55 = vmul.f32 %v175_v51, %v270_v1 }
  0xad   :  { %137 = vst [vmem:[#allocation5 + $0x10] sm:$0xff] %v121_v52  ;;  %188 = vrsqrt.f32 %v96_v53 }
  0xae   :  { %v177_v56 = vpop.eup %176  ;;  %135 = vst [vmem:[#allocation5] sm:$0xff] %v119_v55  ;;  %190 = vrsqrt.f32 %v95_v54  ;;  %v78_v57 = vpop.xlane.xlu1 %77 }
  0xaf   :  { %v76_v58 = vpop.xlane.xlu0 %75  ;;  %v179_v59 = vpop.eup %178  ;;  %v122_v60 = vmul.f32 %v177_v56, %v272_v2  ;;  %v98_v61 = vmax.f32 %v78_v57, 1e-24 }
  0xb0   :  { %v97_v62 = vmax.f32 %v76_v58, 1e-24  ;;  %v120_v63 = vmul.f32 %v179_v59, %v278_v5 }
  0xb1   :  { %138 = vst [vmem:[#allocation5 + $0x18] sm:$0xff] %v122_v60  ;;  %192 = vrsqrt.f32 %v98_v61 }
  0xb2   :  { %v181_v0 = vpop.eup %180  ;;  %136 = vst [vmem:[#allocation5 + $0x8] sm:$0xff] %v120_v63  ;;  %194 = vrsqrt.f32 %v97_v62  ;;  %v82_v1 = vpop.xlane.xlu1 %81 }
  0xb3   :  { %v80_v3 = vpop.xlane.xlu0 %79  ;;  %v183_v4 = vpop.eup %182  ;;  %v124_v6 = vmul.f32 %v181_v0, %v284_v8  ;;  %v100_v7 = vmax.f32 %v82_v1, 1e-24 }
  0xb4   :  { %v99_v10 = vmax.f32 %v80_v3, 1e-24  ;;  %v123_v11 = vmul.f32 %v183_v4, %v286_v9 }
  0xb5   :  { %140 = vst [vmem:[#allocation5 + $0x28] sm:$0xff] %v124_v6  ;;  %196 = vrsqrt.f32 %v100_v7 }
  0xb6   :  { %v185_v2 = vpop.eup %184  ;;  %139 = vst [vmem:[#allocation5 + $0x20] sm:$0xff] %v123_v11  ;;  %198 = vrsqrt.f32 %v99_v10  ;;  %v86_v5 = vpop.xlane.xlu1 %85 }
  0xb7   :  { %v84_v14 = vpop.xlane.xlu0 %83  ;;  %v187_v15 = vpop.eup %186  ;;  %v126_v18 = vmul.f32 %v185_v2, %v292_v12  ;;  %v102_v19 = vmax.f32 %v86_v5, 1e-24 }
  0xb8   :  { %v101_v22 = vmax.f32 %v84_v14, 1e-24  ;;  %v125_v23 = vmul.f32 %v187_v15, %v294_v13 }
  0xb9   :  { %142 = vst [vmem:[#allocation5 + $0x38] sm:$0xff] %v126_v18  ;;  %200 = vrsqrt.f32 %v102_v19 }
  0xba   :  { %v189_v8 = vpop.eup %188  ;;  %141 = vst [vmem:[#allocation5 + $0x30] sm:$0xff] %v125_v23  ;;  %202 = vrsqrt.f32 %v101_v22 }
  0xbb   :  { %v191_v9 = vpop.eup %190  ;;  %v128_v26 = vmul.f32 %v189_v8, %v300_v16 }
  0xbc   :  { %v127_v27 = vmul.f32 %v191_v9, %v302_v17 }
  0xbd   :  { %144 = vst [vmem:[#allocation5 + $0x48] sm:$0xff] %v128_v26 }
  0xbe   :  { %v193_v30 = vpop.eup %192  ;;  %143 = vst [vmem:[#allocation5 + $0x40] sm:$0xff] %v127_v27 }
  0xbf   :  { %v195_v31 = vpop.eup %194  ;;  %v130_v12 = vmul.f32 %v193_v30, %v308_v20 }
  0xc0   :  { %v129_v32 = vmul.f32 %v195_v31, %v310_v21 }
  0xc1   :  { %146 = vst [vmem:[#allocation5 + $0x58] sm:$0xff] %v130_v12 }
  0xc2   :  { %v197_v13 = vpop.eup %196  ;;  %145 = vst [vmem:[#allocation5 + $0x50] sm:$0xff] %v129_v32 }
  0xc3   :  { %v199_v33 = vpop.eup %198  ;;  %v132_v34 = vmul.f32 %v197_v13, %v316_v24 }
  0xc4   :  { %v131_v35 = vmul.f32 %v199_v33, %v318_v25 }
  0xc5   :  { %148 = vst [vmem:[#allocation5 + $0x68] sm:$0xff] %v132_v34 }
  0xc6   :  { %v201_v16 = vpop.eup %200  ;;  %147 = vst [vmem:[#allocation5 + $0x60] sm:$0xff] %v131_v35 }
  0xc7   :  { %v203_v17 = vpop.eup %202  ;;  %v134_v36 = vmul.f32 %v201_v16, %v324_v28 }
  0xc8   :  { %v133_v20 = vmul.f32 %v203_v17, %v326_v29 }
  0xc9   :  { %150 = vst [vmem:[#allocation5 + $0x78] sm:$0xff] %v134_v36 }
  0xca   :  { %149 = vst [vmem:[#allocation5 + $0x70] sm:$0xff] %v133_v20 }
  0xcb   :  { %235 = shalt.err (!%p232_p9)
}
  0xcc   :  { %162 = dma.vmem_to_hbm [thread:$0]  %s157_s13, 2048, %s355_s1, [#allocation4], %s249_s9, %s249_s9, %s250_s10  }
  0xcd   :  { %246 = dma.done.wait [#allocation4], 2048  }
  0xce   :  { %247 = vsyncadd [#allocation4], 4294965248 }
  0xcf   :  { %166 = vsyncpa [#allocation3], 1 }
  0xd0   :  { %167 = vsyncpa [#allocation4], 1 }

</bundles_post_ra>
